<compile_context>
chip_gen: v6e
topology: v6e:2x2x1
jax: 0.10.0
libtpu: 0.0.40
codegen_flags: <defaults>
</compile_context>

<pallas_src>
import jax
import jax.numpy as jnp
from jax import lax
from jax.experimental import pallas as pl
from jax.experimental.pallas import tpu as pltpu


def card_embedding_kernel(idx_ref, table_ref, out_ref):
    idx = idx_ref[...]                                  # (TILE_B, N) int32
    tb, n_cards = idx.shape
    vocab = table_ref.shape[0]                          # 64 (52 real + zero pad)

    iota = lax.broadcasted_iota(jnp.int32, (tb, vocab), 1)   # (TILE_B, 64)

    # Summed one-hot over the card axis, accumulated with plain VALU adds.
    # idx == -1 never matches any column -> invalid cards masked for free.
    oh = jnp.zeros((tb, vocab), dtype=jnp.float32)
    for c in range(n_cards):                            # small static N, unrolled
        oh = oh + (idx[:, c:c + 1] == iota).astype(jnp.float32)

    # Single MXU matmul against the folded (card+rank+suit) table.
    out_ref[...] = jnp.dot(oh, table_ref[...],
                           preferred_element_type=jnp.float32)


def card_embedding(indices, card_w, rank_w, suit_w, *, tile_b=1024):
    """indices: (B, num_cards) int32 in [-1, 51]; returns (B, dim) float32."""
    B, N = indices.shape
    dim = card_w.shape[1]

    # Fold rank/suit into the card table (exact: the gather is linear).
    cards = jnp.arange(52, dtype=jnp.int32)
    combined = card_w + rank_w[cards // 4] + suit_w[cards % 4]   # (52, dim)

    # Pad vocab 52 -> 64 and dim -> multiple of 128 (lane-dense, (8,128)-aligned).
    vocab_p = 64
    dim_p = max(128, ((dim + 127) // 128) * 128)
    table = jnp.zeros((vocab_p, dim_p), jnp.float32)
    table = table.at[:52, :dim].set(combined)

    # Batch tile: keep it a multiple of 8, never absurdly larger than B.
    tile_b = int(min(tile_b, max(8, ((B + 7) // 8) * 8)))
    grid = (pl.cdiv(B, tile_b),)

    out_p = pl.pallas_call(
        card_embedding_kernel,
        out_shape=jax.ShapeDtypeStruct((B, dim_p), jnp.float32),
        grid=grid,
        in_specs=[
            pl.BlockSpec((tile_b, N), lambda i: (i, 0)),
            # Same block every grid step -> table stays resident in VMEM.
            pl.BlockSpec((vocab_p, dim_p), lambda i: (0, 0)),
        ],
        out_specs=pl.BlockSpec((tile_b, dim_p), lambda i: (i, 0)),
        compiler_params=pltpu.CompilerParams(
            dimension_semantics=("parallel",)),
    )(indices.astype(jnp.int32), table)

    return out_p[:, :dim]


def card_embedding_ref(indices, card_w, rank_w, suit_w):
    """Pure-JAX reference mirroring the PyTorch forward."""
    B, N = indices.shape
    x = indices.reshape(-1)
    valid = (x >= 0).astype(jnp.float32)
    x = jnp.maximum(x, 0)
    embs = card_w[x] + rank_w[x // 4] + suit_w[x % 4]
    embs = embs * valid[:, None]
    return embs.reshape(B, N, -1).sum(axis=1)


if __name__ == "__main__":
    key = jax.random.PRNGKey(0)
    k_idx, k_card, k_rank, k_suit, k_idx2 = jax.random.split(key, 5)

    # --- small test (matches module's toy usage) ---------------------------
    B, num_cards, dim = 2, 8, 32
    card_w = jax.random.normal(k_card, (52, dim), dtype=jnp.float32)
    rank_w = jax.random.normal(k_rank, (13, dim), dtype=jnp.float32)
    suit_w = jax.random.normal(k_suit, (4, dim), dtype=jnp.float32)
    indices = jax.random.randint(k_idx, (B, num_cards), -1, 52, dtype=jnp.int32)

    out = jax.block_until_ready(card_embedding(indices, card_w, rank_w, suit_w))
    expected = card_embedding_ref(indices, card_w, rank_w, suit_w)
    assert out.shape == (B, dim)
    assert jnp.allclose(out, expected, atol=1e-4, rtol=1e-4)

    # --- tiled-path test: multiple grid steps + partial last tile ----------
    B2 = 300
    indices2 = jax.random.randint(k_idx2, (B2, num_cards), -1, 52, dtype=jnp.int32)
    out2 = jax.block_until_ready(
        card_embedding(indices2, card_w, rank_w, suit_w, tile_b=128))
    expected2 = card_embedding_ref(indices2, card_w, rank_w, suit_w)
    assert out2.shape == (B2, dim)
    assert jnp.allclose(out2, expected2, atol=1e-4, rtol=1e-4)

    print("KERNEL_OK")
</pallas_src>

<mosaic_0001>
module attributes {stable_mosaic.version = 11 : i64} {
  func.func @card_embedding_kernel(%arg0: i32, %arg1: memref<8x8xi32, #tpu.memory_space<vmem>>, %arg2: memref<64x128xf32, #tpu.memory_space<vmem>>, %arg3: memref<8x128xf32, #tpu.memory_space<vmem>>) attributes {dimension_semantics = [#tpu.dimension_semantics<parallel>], iteration_bounds = array<i64: 1>, scalar_prefetch = 0 : i64, scratch_operands = 0 : i64, tpu.core_type = #tpu.core_type<tc>, window_params = [{transform_indices = @transform_0, window_bounds = array<i64: 8, 8>}, {pipeline_mode = #tpu.pipeline_mode<synchronous>, transform_indices = @transform_1, window_bounds = array<i64: 64, 128>}, {transform_indices = @transform_2, window_bounds = array<i64: 8, 128>}]} {
    %c0 = arith.constant 0 : index
    %c0_0 = arith.constant 0 : index
    %0 = vector.load %arg1[%c0, %c0_0] : memref<8x8xi32, #tpu.memory_space<vmem>>, vector<8x8xi32>
    %1 = tpu.iota {dimensions = array<i32: 1>} : vector<8x64xi32>
    %cst = arith.constant 0.000000e+00 : f32
    %2 = vector.broadcast %cst : f32 to vector<8x64xf32>
    %3 = vector.extract_strided_slice %0 {offsets = [0, 0], sizes = [8, 1], strides = [1, 1]} : vector<8x8xi32> to vector<8x1xi32>
    %4 = vector.broadcast %3 : vector<8x1xi32> to vector<8x64xi32>
    %5 = arith.cmpi eq, %4, %1 : vector<8x64xi32>
    %6 = arith.extui %5 : vector<8x64xi1> to vector<8x64xi32>
    %7 = arith.sitofp %6 : vector<8x64xi32> to vector<8x64xf32>
    %8 = arith.addf %2, %7 : vector<8x64xf32>
    %9 = vector.extract_strided_slice %0 {offsets = [0, 1], sizes = [8, 1], strides = [1, 1]} : vector<8x8xi32> to vector<8x1xi32>
    %10 = vector.broadcast %9 : vector<8x1xi32> to vector<8x64xi32>
    %11 = arith.cmpi eq, %10, %1 : vector<8x64xi32>
    %12 = arith.extui %11 : vector<8x64xi1> to vector<8x64xi32>
    %13 = arith.sitofp %12 : vector<8x64xi32> to vector<8x64xf32>
    %14 = arith.addf %8, %13 : vector<8x64xf32>
    %15 = vector.extract_strided_slice %0 {offsets = [0, 2], sizes = [8, 1], strides = [1, 1]} : vector<8x8xi32> to vector<8x1xi32>
    %16 = vector.broadcast %15 : vector<8x1xi32> to vector<8x64xi32>
    %17 = arith.cmpi eq, %16, %1 : vector<8x64xi32>
    %18 = arith.extui %17 : vector<8x64xi1> to vector<8x64xi32>
    %19 = arith.sitofp %18 : vector<8x64xi32> to vector<8x64xf32>
    %20 = arith.addf %14, %19 : vector<8x64xf32>
    %21 = vector.extract_strided_slice %0 {offsets = [0, 3], sizes = [8, 1], strides = [1, 1]} : vector<8x8xi32> to vector<8x1xi32>
    %22 = vector.broadcast %21 : vector<8x1xi32> to vector<8x64xi32>
    %23 = arith.cmpi eq, %22, %1 : vector<8x64xi32>
    %24 = arith.extui %23 : vector<8x64xi1> to vector<8x64xi32>
    %25 = arith.sitofp %24 : vector<8x64xi32> to vector<8x64xf32>
    %26 = arith.addf %20, %25 : vector<8x64xf32>
    %27 = vector.extract_strided_slice %0 {offsets = [0, 4], sizes = [8, 1], strides = [1, 1]} : vector<8x8xi32> to vector<8x1xi32>
    %28 = vector.broadcast %27 : vector<8x1xi32> to vector<8x64xi32>
    %29 = arith.cmpi eq, %28, %1 : vector<8x64xi32>
    %30 = arith.extui %29 : vector<8x64xi1> to vector<8x64xi32>
    %31 = arith.sitofp %30 : vector<8x64xi32> to vector<8x64xf32>
    %32 = arith.addf %26, %31 : vector<8x64xf32>
    %33 = vector.extract_strided_slice %0 {offsets = [0, 5], sizes = [8, 1], strides = [1, 1]} : vector<8x8xi32> to vector<8x1xi32>
    %34 = vector.broadcast %33 : vector<8x1xi32> to vector<8x64xi32>
    %35 = arith.cmpi eq, %34, %1 : vector<8x64xi32>
    %36 = arith.extui %35 : vector<8x64xi1> to vector<8x64xi32>
    %37 = arith.sitofp %36 : vector<8x64xi32> to vector<8x64xf32>
    %38 = arith.addf %32, %37 : vector<8x64xf32>
    %39 = vector.extract_strided_slice %0 {offsets = [0, 6], sizes = [8, 1], strides = [1, 1]} : vector<8x8xi32> to vector<8x1xi32>
    %40 = vector.broadcast %39 : vector<8x1xi32> to vector<8x64xi32>
    %41 = arith.cmpi eq, %40, %1 : vector<8x64xi32>
    %42 = arith.extui %41 : vector<8x64xi1> to vector<8x64xi32>
    %43 = arith.sitofp %42 : vector<8x64xi32> to vector<8x64xf32>
    %44 = arith.addf %38, %43 : vector<8x64xf32>
    %45 = vector.extract_strided_slice %0 {offsets = [0, 7], sizes = [8, 1], strides = [1, 1]} : vector<8x8xi32> to vector<8x1xi32>
    %46 = vector.broadcast %45 : vector<8x1xi32> to vector<8x64xi32>
    %47 = arith.cmpi eq, %46, %1 : vector<8x64xi32>
    %48 = arith.extui %47 : vector<8x64xi1> to vector<8x64xi32>
    %49 = arith.sitofp %48 : vector<8x64xi32> to vector<8x64xf32>
    %50 = arith.addf %44, %49 : vector<8x64xf32>
    %c0_1 = arith.constant 0 : index
    %c0_2 = arith.constant 0 : index
    %51 = vector.load %arg2[%c0_1, %c0_2] : memref<64x128xf32, #tpu.memory_space<vmem>>, vector<64x128xf32>
    %cst_3 = arith.constant dense<0.000000e+00> : vector<8x128xf32>
    %52 = tpu.matmul %50, %51, %cst_3 {dimension_numbers = #tpu.dot_dimension_numbers<[1], [0], [0], [1], [0, 0, 1, 1], [], []>} : vector<8x64xf32>, vector<64x128xf32>, vector<8x128xf32> -> vector<8x128xf32>
    %c0_4 = arith.constant 0 : index
    %c0_5 = arith.constant 0 : index
    %53 = vector.load %arg3[%c0_4, %c0_5] : memref<8x128xf32, #tpu.memory_space<vmem>>, vector<8x128xf32>
    tpu.vector_store %arg3[%c0_4, %c0_5], %52 {strides = array<i32>} : memref<8x128xf32, #tpu.memory_space<vmem>>, vector<8x128xf32>,
    return
  }
  func.func @transform_0(%arg0: i32) -> (i32, i32) {
    %c0_i32 = arith.constant 0 : i32
    %c0_i32_0 = arith.constant 0 : i32
    return %arg0, %c0_i32 : i32, i32
  }
  func.func @transform_1(%arg0: i32) -> (i32, i32) {
    %c0_i32 = arith.constant 0 : i32
    %c0_i32_0 = arith.constant 0 : i32
    %c0_i32_1 = arith.constant 0 : i32
    return %c0_i32, %c0_i32_0 : i32, i32
  }
  func.func @transform_2(%arg0: i32) -> (i32, i32) {
    %c0_i32 = arith.constant 0 : i32
    %c0_i32_0 = arith.constant 0 : i32
    return %arg0, %c0_i32 : i32, i32
  }
}

</mosaic_0001>

<bundles_post_ra>
// kernel: tpu_custom_call.1
= control target key start
LH: loop header
LB: loop body
LE: loop exit
PB: predicated region body
PF: predicated region fallthrough
CT: control target
= control target key end

     0   :  { %7 = vsyncpa [#allocation3], 0  ;;  %s393_s0 = inlined_call_operand.hbm [shape: s32[2,8], index: 0, kind: input, shape index: {}]   ;;  %s394_s1 = inlined_call_operand.hbm [shape: f32[64,128], index: 1, kind: input, shape index: {}]   ;;  %s395_s2 = inlined_call_operand.hbm [shape: f32[2,128], index: 2, kind: output, shape index: {}]  }
   0x1   :  { %8 = vsyncpa [#allocation6], 0 }
   0x2   :  { %9 = vsyncpa [#allocation4], 0 }
   0x3   :  { %14 = vsyncadd [#allocation3], 96  ;;  %s329_s9 = smov [#allocation2]  }
   0x4   :  { %s15_s10 = sshll.u32 %s329_s9, 4  ;;  %s16_s10 = int_to_ptr.vmem [resolvable:$true] %s15_s10 }
   0x5   :  { %s271_s11 = scalar_lea.vmem %s16_s10, 32  ;;  %s275_s12 = scalar_lea.vmem %s16_s10, 128 }
   0x6   :  { %p272_p0 = scmp.ne.s32.totalorder %s16_s10, %s271_s11  ;;  %p276_p1 = scmp.lt.s32.totalorder %s16_s10, %s16_s10 }
   0x7   :  { %p277_p2 = scmp.lt.s32.totalorder %s275_s12, %s271_s11 }
   0x9   :  { %p278_p3 = por %p277_p2, %p276_p1 }
   0xb   :  { %p279_p4 = pnand %p278_p3, %p272_p0 }
   0xd   :  { %282 = shalt.err (!%p279_p4)
}
   0xe   :  { %s330_s13 = smov 32   ;;  %s331_s14 = smov 2  }
   0xf   :  { %21 = dma.hbm_to_vmem [thread:$0]  %s393_s0, 32, %s16_s10, [#allocation3], %s330_s13, %s330_s13, %s331_s14  }
  0x10   :  { %s332_s17 = smov [#allocation5]  }
  0x11   :  { %s27_s18 = sshll.u32 %s332_s17, 4  ;;  %s28_s18 = int_to_ptr.vmem [resolvable:$true] %s27_s18 }
  0x12   :  { %s291_s19 = scalar_lea.vmem %s28_s18, 1024  ;;  %p296_p6 = scmp.lt.s32.totalorder %s28_s18, %s28_s18 }
  0x13   :  { %p292_p5 = scmp.ne.s32.totalorder %s28_s18, %s291_s19  ;;  %p297_p7 = scmp.lt.s32.totalorder %s291_s19, %s291_s19 }
  0x15   :  { %p298_p8 = por %p297_p7, %p296_p6 }
  0x17   :  { %p299_p9 = pnand %p298_p8, %p292_p5 }
  0x19   :  { %302 = shalt.err (!%p299_p9)
}
  0x1a   :  { %s333_s20 = smov 128   ;;  %s334_s21 = smov 8  }
  0x1b   :  { %33 = dma.hbm_to_vmem [thread:$0]  %s394_s1, 1024, %s28_s18, [#allocation6], %s333_s20, %s333_s20, %s334_s21  }
  0x1c   :  { %323 = dma.done.wait [#allocation3], 128  }
  0x1d   :  { %324 = vsyncadd [#allocation3], 4294967168 }
  0x1e   :  { %325 = dma.done.wait [#allocation6], 1024  }
  0x1f   :  { %326 = vsyncadd [#allocation6], 4294966272  ;;  %v335_v0 = vmov 2   ;;  %v336_v1 = vmov 0   ;;  %v337_v2 = vmov 0.0   ;;  %v40_v3 = vld [vmem:[#allocation2] sm:$0xff]  ;;  %v41_v18 = vlaneseq }
  0x20   :  { %256 = vset.pattern.permute.xlu1 %v335_v0  ;;  %254 = vset.pattern.permute.xlu0 %v336_v1  ;;  %v338_v4 = vmov 3   ;;  %v339_v5 = vmov 1   ;;  %v106_v6 = vld [vmem:[#allocation5 + $0x38] sm:$0xff]  ;;  %v105_v7 = vld [vmem:[#allocation5 + $0x30] sm:$0xff]  ;;  %v340_v8 = vmov 4   ;;  %v341_v9 = vmov 5  }
  0x21   :  { %218 = vmatprep.subr.mxu0 %v337_v2  ;;  %58 = vperm.xlu1 %256, %v40_v3   ;;  %v104_v10 = vld [vmem:[#allocation5 + $0x28] sm:$0xff]  ;;  %v103_v11 = vld [vmem:[#allocation5 + $0x20] sm:$0xff]  ;;  %v102_v12 = vld [vmem:[#allocation5 + $0x18] sm:$0xff]  ;;  %v342_v13 = vmov 6   ;;  %v343_v15 = vmov 7   ;;  %vm344_vm0 = vmmov 0  }
  0x22   :  { %44 = vperm.xlu0 %254, %v40_v3   ;;  %219 = vmatpush3.msra.mxu0 %v106_v6  ;;  %v101_v14 = vld [vmem:[#allocation5 + $0x10] sm:$0xff]  ;;  %v100_v16 = vld [vmem:[#allocation5 + $0x8] sm:$0xff]  ;;  %v99_v17 = vld [vmem:[#allocation5] sm:$0xff]  ;;  %v42_v21 = vand.u32 127, %v41_v18  ;;  %vm107_vm9 = vcmask 523264  }
  0x23   :  { %220 = vmatprep.subr.mxu0 %v337_v2  ;;  %234 = vmatprep.mubr.msk.f32.mxu0 %vm344_vm0, %v337_v2 }
  0x24   :  { %221 = vmatpush3.msra.mxu0 %v105_v7 }
  0x25   :  { %257 = vset.pattern.permute.xlu1 %v338_v4  ;;  %222 = vmatprep.subr.mxu0 %v337_v2 }
  0x26   :  { %255 = vset.pattern.permute.xlu0 %v339_v5  ;;  %65 = vperm.xlu1 %257, %v40_v3  }
  0x27   :  { %51 = vperm.xlu0 %255, %v40_v3   ;;  %223 = vmatpush3.msra.mxu0 %v104_v10 }
  0x28   :  { %224 = vmatprep.subr.mxu0 %v337_v2 }
  0x29   :  { %225 = vmatpush3.msra.mxu0 %v103_v11 }
  0x2a   :  { %258 = vset.pattern.permute.xlu1 %v340_v8  ;;  %226 = vmatprep.subr.mxu0 %v337_v2 }
  0x2b   :  { %259 = vset.pattern.permute.xlu0 %v341_v9  ;;  %72 = vperm.xlu1 %258, %v40_v3  }
  0x2c   :  { %79 = vperm.xlu0 %259, %v40_v3   ;;  %227 = vmatpush3.msra.mxu0 %v102_v12 }
  0x2d   :  { %228 = vmatprep.subr.mxu0 %v337_v2 }
  0x2e   :  { %229 = vmatpush3.msra.mxu0 %v101_v14 }
  0x2f   :  { %260 = vset.pattern.permute.xlu1 %v342_v13  ;;  %230 = vmatprep.subr.mxu0 %v337_v2 }
  0x30   :  { %86 = vperm.xlu1 %260, %v40_v3   ;;  %262 = vset.pattern.permute.xlu0 %v343_v15 }
  0x31   :  { %231 = vmatpush3.msra.mxu0 %v100_v16 }
  0x32   :  { %232 = vmatprep.subr.mxu0 %v337_v2 }
  0x33   :  { %233 = vmatpush3.msra.mxu0 %v99_v17 }
  0x34   :  { %261 = vset.pattern.permute.xlu1 %v343_v15 }
  0x35   :  { %93 = vperm.xlu1 %261, %v40_v3  }
  0x9c   :  { %v59_v19 = vpop.permute.xlu1 %58 }
  0x9d   :  { %v45_v20 = vpop.permute.xlu0 %44  ;;  %vm60_vm2 = vcmp.eq.s32.totalorder %v59_v19, %v42_v21 }
  0x9e   :  { %vm46_vm1 = vcmp.eq.s32.totalorder %v45_v20, %v42_v21  ;;  %v202_v27 = vsel %vm60_vm2, 1.0, %v337_v2 }
  0x9f   :  { %v200_v24 = vsel %vm46_vm1, 1.0, %v337_v2 }
  0xa1   :  { %v66_v22 = vpop.permute.xlu1 %65 }
  0xa2   :  { %v52_v23 = vpop.permute.xlu0 %51  ;;  %vm67_vm4 = vcmp.eq.s32.totalorder %v66_v22, %v42_v21 }
  0xa3   :  { %vm53_vm3 = vcmp.eq.s32.totalorder %v52_v23, %v42_v21  ;;  %v203_v31 = vsel %vm67_vm4, 1.0, %v337_v2 }
  0xa4   :  { %v201_v25 = vsel %vm53_vm3, 1.0, %v337_v2 }
  0xa5   :  { %v56_v26 = vadd.f32 %v201_v25, %v200_v24 }
  0xa6   :  { %v73_v29 = vpop.permute.xlu1 %72 }
  0xa7   :  { %v63_v28 = vadd.f32 %v202_v27, %v56_v26  ;;  %v80_v30 = vpop.permute.xlu0 %79  ;;  %vm74_vm5 = vcmp.eq.s32.totalorder %v73_v29, %v42_v21 }
  0xa8   :  { %vm81_vm6 = vcmp.eq.s32.totalorder %v80_v30, %v42_v21  ;;  %v204_v33 = vsel %vm74_vm5, 1.0, %v337_v2 }
  0xa9   :  { %v70_v32 = vadd.f32 %v203_v31, %v63_v28  ;;  %v205_v35 = vsel %vm81_vm6, 1.0, %v337_v2 }
  0xab   :  { %v77_v34 = vadd.f32 %v204_v33, %v70_v32  ;;  %v87_v36 = vpop.permute.xlu1 %86 }
  0xac   :  { %vm88_vm7 = vcmp.eq.s32.totalorder %v87_v36, %v42_v21 }
  0xad   :  { %v84_v37 = vadd.f32 %v205_v35, %v77_v34  ;;  %v206_v38 = vsel %vm88_vm7, 1.0, %v337_v2 }
  0xaf   :  { %v91_v40 = vadd.f32 %v206_v38, %v84_v37 }
  0xb0   :  { %v94_v39 = vpop.permute.xlu1 %93 }
  0xb1   :  { %vm95_vm8 = vcmp.eq.s32.totalorder %v94_v39, %v42_v21 }
  0xb2   :  { %v207_v41 = vsel %vm95_vm8, 1.0, %v337_v2 }
  0xb3   :  { %v98_v42 = vadd.f32 %v207_v41, %v91_v40 }
  0xb5   :  { %235 = vmatmul.mubr.msk.f32.vlgmr.msra.gmra.mxu0 %vm107_vm9, %v98_v42 }
 0x175   :  { %v177_v43 = vpop.f32.mrf.mxu0 }
 0x176   :  { %181 = vst [vmem:[#allocation7] sm:$0xff] %v177_v43 }
 0x177   :  { %v236_v44 = vpop.f32.mrf.mxu0 }
 0x178   :  { %186 = vsyncadd [#allocation4], 96  ;;  %s345_s0 = smov [#allocation7]  }
 0x179   :  { %s187_s1 = sshll.u32 %s345_s0, 4  ;;  %s188_s1 = int_to_ptr.vmem [resolvable:$true] %s187_s1 }
 0x17a   :  { %s303_s24 = scalar_lea.vmem %s188_s1, 32  ;;  %s307_s25 = scalar_lea.vmem %s188_s1, 128 }
 0x17b   :  { %p304_p10 = scmp.ne.s32.totalorder %s188_s1, %s303_s24  ;;  %p308_p11 = scmp.lt.s32.totalorder %s188_s1, %s188_s1 }
 0x17c   :  { %p309_p12 = scmp.lt.s32.totalorder %s307_s25, %s303_s24 }
 0x17e   :  { %p310_p13 = por %p309_p12, %p308_p11 }
 0x180   :  { %p311_p0 = pnand %p310_p13, %p304_p10 }
 0x182   :  { %314 = shalt.err (!%p311_p0)
}
 0x183   :  { %193 = dma.vmem_to_hbm [thread:$0]  %s188_s1, 32, %s395_s2, [#allocation4], %s330_s13, %s330_s13, %s331_s14  }
 0x184   :  { %327 = dma.done.wait [#allocation4], 128  }
 0x185   :  { %328 = vsyncadd [#allocation4], 4294967168 }
 0x186   :  { %197 = vsyncpa [#allocation3], 1 }
 0x187   :  { %198 = vsyncpa [#allocation6], 1 }
 0x188   :  { %199 = vsyncpa [#allocation4], 1 }

</bundles_post_ra>
